<compile_context>
chip_gen: v5e
topology: v5e:2x2
jax: 0.10.0
libtpu: 0.0.40
codegen_flags: <defaults>
</compile_context>

<pallas_src>
import numpy as np
import jax
import jax.numpy as jnp
from jax.experimental import pallas as pl
from jax.experimental.pallas import tpu as pltpu


# ---------------------------------------------------------------------------
# Deterministic RNG sequence (stand-in for UnarySim's Sobol RNG).
# TODO(synk): exact PyTorch SobolEngine(dim=5) direction numbers are not
# reproduced; we use the base-2 Van der Corput (= Sobol dim-1) sequence, which
# is deterministic and has rng[0] == 0 (so the module's assert passes on the
# first cycle).  Host-side numpy -> indexing it never triggers a device sync.
# NOTE: tie rng_width to ceil(log2(N)) so every value in the sequence is a
# valid index along the addition axis (the spec's assert would otherwise fire
# on later cycles).
# ---------------------------------------------------------------------------
def make_rng_seq(width=8):
    n = 1 << width
    i = np.arange(n, dtype=np.uint32)
    rev = np.zeros_like(i)
    for b in range(width):
        rev |= ((i >> b) & 1) << (width - 1 - b)
    return rev.astype(np.int32)  # values in [0, 2**width)


# ---------------------------------------------------------------------------
# Generation-aware VMEM / tile budgets.
# ---------------------------------------------------------------------------
def _tpu_vmem_bytes():
    try:
        return int(pltpu.get_tpu_info().vmem_capacity_bytes)
    except Exception:
        return 64 << 20  # conservative default: v7x per-TC physical VMEM


def _block_budget_bytes():
    # Per-block byte budget.  Blocks are double-buffered, so keep ~1/8 of
    # VMEM per block: ~8 MiB on v7x (64 MiB VMEM), capped at 12 MiB on
    # v5e/v6e (128 MiB VMEM), floor 2 MiB.
    vmem = _tpu_vmem_bytes()
    return int(min(12 << 20, max(2 << 20, vmem // 8)))


def _vmem_limit_bytes():
    # Explicit scoped-VMEM limit: 48 MiB on v7x, up to 96 MiB on v5e/v6e.
    vmem = _tpu_vmem_bytes()
    return int(min(vmem * 3 // 4, 96 << 20))


def _sublane_align(itemsize):
    return {4: 8, 2: 16, 1: 32}.get(itemsize, 8)


def _choose_tiles(h, w, bytes_per_elem, sub, max_block_bytes):
    """Pick (th, tw): prefer full-width contiguous tiles, shrink th first."""
    tw = w
    rows = max_block_bytes // max(1, tw * bytes_per_elem)
    if rows < sub and w > 128:
        # Even a minimal sublane-aligned full-width block is too big: fall
        # back to a lane-dense partial-width tile (multiple of 128 lanes).
        tw = max(128, (max_block_bytes // (sub * bytes_per_elem) // 128) * 128)
        rows = max(sub, max_block_bytes // max(1, tw * bytes_per_elem))
    th = h if h <= rows else max(sub, (rows // sub) * sub)
    return th, tw


def _maybe_split_for_dual_tc(h, w, th, tw, sub, bytes_per_elem,
                             min_bytes=512 * 1024):
    """Ensure >=2 blocks along a 'parallel' axis so v7x's two TensorCores
    both get work; neutral on v5e/v6e (1 TC).  Skip tiny workloads."""
    if pl.cdiv(h, th) * pl.cdiv(w, tw) >= 2:
        return th, tw
    if h * w * bytes_per_elem < min_bytes:
        return th, tw
    if th > sub:
        half = -(-((th + 1) // 2) // sub) * sub      # ceil to sublane multiple
        if half < th:
            return half, tw
    if tw > 128:
        half = -(-((tw + 1) // 2) // 128) * 128      # ceil to lane multiple
        if half < tw:
            return th, half
    return th, tw


# ---------------------------------------------------------------------------
# Kernel 1: scaled addition = random MUX (index-select along dim 0),
# batched over T stochastic cycles in one launch.
# The per-cycle indices live in SMEM via scalar prefetch and drive the
# index_map, so only selected (th, tw) slices are DMA'd, pipelined.
# ---------------------------------------------------------------------------
def _mux_select_kernel(idx_ref, x_ref, o_ref):
    del idx_ref  # consumed by the index_maps
    o_ref[...] = x_ref[...].astype(o_ref.dtype)   # pure copy when dtypes match


def mux_select(x, idx, out_dtype=jnp.float32):
    """out[t] = x[idx[t]] for each cycle t.  idx: int32 (T,).  -> (T, H, W)."""
    n, h, w = x.shape
    t = int(idx.shape[0])
    in_item = jnp.dtype(x.dtype).itemsize
    out_item = jnp.dtype(out_dtype).itemsize
    sub = _sublane_align(in_item)
    budget = _block_budget_bytes()
    th, tw = _choose_tiles(h, w, in_item + out_item, sub, budget)
    if t == 1:
        th, tw = _maybe_split_for_dual_tc(h, w, th, tw, sub, in_item + out_item)
    grid = (t, pl.cdiv(h, th), pl.cdiv(w, tw))
    return pl.pallas_call(
        _mux_select_kernel,
        out_shape=jax.ShapeDtypeStruct((t, h, w), out_dtype),
        grid_spec=pltpu.PrefetchScalarGridSpec(
            num_scalar_prefetch=1,
            grid=grid,
            in_specs=[
                # dim-0 block index == element index (block size 1, squeezed)
                pl.BlockSpec((pl.Squeezed(), th, tw),
                             lambda t_, i, j, idx_ref: (idx_ref[t_], i, j)),
            ],
            out_specs=pl.BlockSpec((pl.Squeezed(), th, tw),
                                   lambda t_, i, j, idx_ref: (t_, i, j)),
        ),
        compiler_params=pltpu.CompilerParams(
            dimension_semantics=("parallel", "parallel", "parallel"),
            vmem_limit_bytes=_vmem_limit_bytes()),
    )(idx, x)


# ---------------------------------------------------------------------------
# Kernel 2: non-scaled addition = OR gate over dim 0.
# Bit-streams are {0,1} (non-scaled path is unipolar only), so OR == running
# max in the NATIVE dtype.  N lives on a trailing "arbitrary" reduction grid
# axis with a VMEM accumulator, so (th, tw) stays large regardless of N.
# ---------------------------------------------------------------------------
def _or_gate_kernel(x_ref, o_ref, acc_ref):
    k = pl.program_id(2)
    blk = jnp.max(x_ref[...], axis=0)          # native dtype; no f32 upcast

    @pl.when(k == 0)
    def _init():
        acc_ref[...] = blk

    @pl.when(k > 0)
    def _accum():
        acc_ref[...] = jnp.maximum(acc_ref[...], blk)

    @pl.when(k == pl.num_programs(2) - 1)
    def _store():
        o_ref[...] = acc_ref[...].astype(o_ref.dtype)


def or_gate_add(x, out_dtype=jnp.float32):
    n, h, w = x.shape
    in_item = jnp.dtype(x.dtype).itemsize
    out_item = jnp.dtype(out_dtype).itemsize
    sub = _sublane_align(in_item)
    budget = _block_budget_bytes()
    th, tw = _choose_tiles(h, w, in_item + out_item, sub, budget)
    th, tw = _maybe_split_for_dual_tc(h, w, th, tw, sub, in_item + out_item)
    # Whole-N block when it fits the budget; otherwise one N-slice per grid
    # step (tn=1), so the reduction never folds in padded garbage rows.
    tn = n if n * th * tw * in_item <= budget else 1
    grid = (pl.cdiv(h, th), pl.cdiv(w, tw), pl.cdiv(n, tn))
    return pl.pallas_call(
        _or_gate_kernel,
        out_shape=jax.ShapeDtypeStruct((h, w), out_dtype),
        grid=grid,
        in_specs=[pl.BlockSpec((tn, th, tw), lambda i, j, k: (k, i, j))],
        out_specs=pl.BlockSpec((th, tw), lambda i, j, k: (i, j)),
        scratch_shapes=[pltpu.VMEM((th, tw), x.dtype)],
        compiler_params=pltpu.CompilerParams(
            dimension_semantics=("parallel", "parallel", "arbitrary"),
            vmem_limit_bytes=_vmem_limit_bytes()),
    )(x)


# ---------------------------------------------------------------------------
# Module wrapper reproducing GainesAdd forward semantics.
# ---------------------------------------------------------------------------

# Below ~512K output elements, pallas_call dispatch + the tiny idx H2D cost
# more than letting XLA fuse the trivial select / OR with neighbouring ops.
_PALLAS_MIN_OUT_ELEMS = 512 * 1024


class GainesAddPallas:
    def __init__(self, mode="bipolar", scaled=True, dim=0,
                 rng="Sobol", rng_dim=5, rng_width=8, stype=jnp.float32,
                 min_pallas_out_elems=_PALLAS_MIN_OUT_ELEMS):
        self.mode = mode
        self.scaled = scaled
        if self.mode == "bipolar" and self.scaled is False:
            raise ValueError(
                "Non-scaled addition for bipolar data is not supported in "
                "Gaines approach.")
        self.dim = dim
        self.stype = stype
        self.min_pallas_out_elems = min_pallas_out_elems
        # Host numpy -> no device syncs.  Choose rng_width = ceil(log2(N)) so
        # every value is a valid index along the addition axis.
        self.rng = make_rng_seq(rng_width)
        # rng_idx is a non-trainable buffer in PyTorch; kept as host-side
        # Python state here (it is mutated each forward call).
        # TODO(synk): if this module is captured inside jit/scan the index
        # will not advance per step; use forward_scaled_cycles() instead.
        self.rng_idx = 0

    def _next_rand(self, n):
        rand_num = int(self.rng[self.rng_idx])  # host-side, no device sync
        assert rand_num < n, (
            "randNum should be smaller than the dimension size of addition.")
        self.rng_idx = (self.rng_idx + 1) % int(self.rng.shape[0])
        return rand_num

    def __call__(self, x):
        assert self.dim == 0, "kernel layout assumes addition along dim 0"
        assert x.ndim == 3, "expected (N, H, W) bit-stream layout"
        n, h, w = x.shape
        out_elems = h * w
        if self.scaled:
            rand_num = self._next_rand(n)
            if out_elems <= self.min_pallas_out_elems:
                return x[rand_num].astype(self.stype)        # tiny: XLA path
            idx = jnp.asarray([rand_num], dtype=jnp.int32)
            return mux_select(x, idx, out_dtype=self.stype)[0]
        else:
            if out_elems <= self.min_pallas_out_elems:
                return (jnp.sum(x, axis=0) > 0).astype(self.stype)
            return or_gate_add(x, out_dtype=self.stype)

    def forward_scaled_cycles(self, x, num_cycles):
        """Run `num_cycles` scaled-add (MUX) cycles in ONE pallas_call.
        Returns (num_cycles, H, W); amortizes per-call dispatch / H2D."""
        assert self.scaled, "batched cycles only apply to the scaled (MUX) path"
        assert self.dim == 0 and x.ndim == 3
        n = x.shape[0]
        idx_host = np.empty((num_cycles,), dtype=np.int32)
        for t in range(num_cycles):
            idx_host[t] = self._next_rand(n)
        return mux_select(x, jnp.asarray(idx_host), out_dtype=self.stype)


if __name__ == "__main__":
    key = jax.random.PRNGKey(0)
    k1, k2, k3 = jax.random.split(key, 3)

    # Small shapes; min_pallas_out_elems=0 forces the Pallas paths.
    N, H, W = 4, 16, 128

    # --- bipolar, scaled (default): random MUX, two sequential cycles -------
    x_bi = jnp.where(jax.random.bernoulli(k1, 0.5, (N, H, W)),
                     1.0, -1.0).astype(jnp.float32)
    gaines_mux = GainesAddPallas(mode="bipolar", scaled=True, rng_width=2,
                                 min_pallas_out_elems=0)
    rng_seq = gaines_mux.rng  # [0, 2, 1, 3]; rng[0] == 0 as in the spec
    y0 = jax.block_until_ready(gaines_mux(x_bi))
    y1 = jax.block_until_ready(gaines_mux(x_bi))
    assert y0.shape == (H, W) and y0.dtype == jnp.float32
    assert jnp.array_equal(y0, x_bi[int(rng_seq[0])].astype(jnp.float32))
    assert jnp.array_equal(y1, x_bi[int(rng_seq[1])].astype(jnp.float32))

    # --- bipolar, scaled: batched T=3 cycles in one launch ------------------
    gaines_batch = GainesAddPallas(mode="bipolar", scaled=True, rng_width=2,
                                   min_pallas_out_elems=0)
    yb = jax.block_until_ready(gaines_batch.forward_scaled_cycles(x_bi, 3))
    assert yb.shape == (3, H, W)
    for t in range(3):
        assert jnp.array_equal(yb[t], x_bi[int(rng_seq[t])].astype(jnp.float32))

    # --- unipolar, non-scaled: OR gate (f32 {0,1} bit-streams) --------------
    x_uni = jax.random.bernoulli(k2, 0.3, (N, H, W)).astype(jnp.float32)
    gaines_or = GainesAddPallas(mode="unipolar", scaled=False,
                                min_pallas_out_elems=0)
    y_or = jax.block_until_ready(gaines_or(x_uni))
    ref_or = (jnp.sum(x_uni, axis=0) > 0).astype(jnp.float32)
    assert y_or.shape == (H, W) and y_or.dtype == jnp.float32
    assert jnp.array_equal(y_or, ref_or)

    # --- unipolar, non-scaled: OR gate, int8 bit-streams (4x less HBM) ------
    x_i8 = jax.random.bernoulli(k3, 0.3, (N, H, W)).astype(jnp.int8)
    gaines_or_i8 = GainesAddPallas(mode="unipolar", scaled=False,
                                   stype=jnp.int8, min_pallas_out_elems=0)
    y_i8 = jax.block_until_ready(gaines_or_i8(x_i8))
    ref_i8 = (jnp.sum(x_i8.astype(jnp.int32), axis=0) > 0).astype(jnp.int8)
    assert y_i8.shape == (H, W) and y_i8.dtype == jnp.int8
    assert jnp.array_equal(y_i8, ref_i8)

    print("KERNEL_OK")
</pallas_src>

<mosaic_0001>
module attributes {stable_mosaic.version = 11 : i64} {
  func.func @_mux_select_kernel(%arg0: i32, %arg1: i32, %arg2: i32, %arg3: memref<1xi32, #tpu.memory_space<smem>>, %arg4: memref<1x16x128xf32, #tpu.memory_space<vmem>>, %arg5: memref<1x16x128xf32, #tpu.memory_space<vmem>>) attributes {dimension_semantics = [#tpu.dimension_semantics<parallel>, #tpu.dimension_semantics<parallel>, #tpu.dimension_semantics<parallel>], iteration_bounds = array<i64: 1, 1, 1>, scalar_prefetch = 1 : i64, scratch_operands = 0 : i64, tpu.core_type = #tpu.core_type<tc>, window_params = [{transform_indices = @transform_0, window_bounds = array<i64: 1, 16, 128>}, {transform_indices = @transform_1, window_bounds = array<i64: 1, 16, 128>}]} {
    %c0 = arith.constant 0 : index
    %c0_0 = arith.constant 0 : index
    %c0_1 = arith.constant 0 : index
    %0 = vector.load %arg4[%c0, %c0_0, %c0_1] : memref<1x16x128xf32, #tpu.memory_space<vmem>>, vector<1x16x128xf32>
    %1 = vector.shape_cast %0 : vector<1x16x128xf32> to vector<16x128xf32>
    %c0_2 = arith.constant 0 : index
    %c0_3 = arith.constant 0 : index
    %c0_4 = arith.constant 0 : index
    %2 = vector.load %arg5[%c0_2, %c0_3, %c0_4] : memref<1x16x128xf32, #tpu.memory_space<vmem>>, vector<1x16x128xf32>
    %3 = vector.shape_cast %2 : vector<1x16x128xf32> to vector<16x128xf32>
    %4 = vector.shape_cast %1 : vector<16x128xf32> to vector<1x16x128xf32>
    tpu.vector_store %arg5[%c0_2, %c0_3, %c0_4], %4 {strides = array<i32>} : memref<1x16x128xf32, #tpu.memory_space<vmem>>, vector<1x16x128xf32>,
    return
  }
  func.func @transform_0(%arg0: i32, %arg1: i32, %arg2: i32, %arg3: memref<1xi32, #tpu.memory_space<smem>>) -> (i32, i32, i32) {
    %0 = arith.index_cast %arg0 : i32 to index
    %1 = memref.load %arg3[%0] : memref<1xi32, #tpu.memory_space<smem>>
    %c0_i32 = arith.constant 0 : i32
    return %1, %arg1, %arg2 : i32, i32, i32
  }
  func.func @transform_1(%arg0: i32, %arg1: i32, %arg2: i32, %arg3: memref<1xi32, #tpu.memory_space<smem>>) -> (i32, i32, i32) {
    %c0_i32 = arith.constant 0 : i32
    return %arg0, %arg1, %arg2 : i32, i32, i32
  }
}

</mosaic_0001>

<bundles_post_ra>
// kernel: tpu_custom_call.1
= control target key start
LH: loop header
LB: loop body
LE: loop exit
PB: predicated region body
PF: predicated region fallthrough
CT: control target
= control target key end

     0   :  { %8 = vsyncpa [#allocation5], 0  ;;  %s150_s0 = inlined_call_operand.<no memory space> [shape: s32[1], index: 0, kind: input, shape index: {}]   ;;  %s151_s1 = inlined_call_operand.hbm [shape: f32[4,16,128], index: 1, kind: input, shape index: {}]   ;;  %s152_s2 = inlined_call_operand.hbm [shape: f32[1,16,128], index: 2, kind: output, shape index: {}]  }
   0x1   :  { %9 = vsyncpa [#allocation6], 0  ;;  %s59_s11 = sshll.u32 %s150_s0, 4  ;;  %s116_s15 = smov [#allocation4]  }
   0x2   :  { %s17_s14 = scalar_lea.hbm %s151_s1, %s59_s11  ;;  %s20_s16 = sshll.u32 %s116_s15, 4  ;;  %s21_s16 = int_to_ptr.vmem [resolvable:$true] %s20_s16 }
   0x3   :  { %s18_s17 = sshll.u32 %s17_s14, 4  ;;  %s68_s22 = scalar_lea.hbm %s151_s1, 64  ;;  %s19_s17 = int_to_ptr.hbm [resolvable:$true] %s18_s17 }
   0x4   :  { %s64_s18 = sshra.s32 %s19_s17, 4  ;;  %s65_s18 = int_to_ptr.hbm [resolvable:$true] %s64_s18 }
   0x5   :  { %s66_s19 = scalar_lea.hbm %s65_s18, 16  ;;  %p69_p1 = scmp.lt.s32.totalorder %s65_s18, %s151_s1 }
   0x6   :  { %p67_p0 = scmp.ne.s32.totalorder %s65_s18, %s66_s19  ;;  %p70_p2 = scmp.lt.s32.totalorder %s68_s22, %s66_s19 }
   0x8   :  { %p71_p3 = por %p70_p2, %p69_p1 }
   0xa   :  { %p72_p4 = pnand %p71_p3, %p67_p0 }
   0xc   :  { %75 = shalt.err (!%p72_p4)
}
   0xd   :  { %s117_s0 = smov 128   ;;  %s118_s25 = smov 8  }
   0xe   :  { %26 = dma.hbm_to_vmem [thread:$0]  %s19_s17, 256, %s21_s16, [#allocation5], %s117_s0, %s117_s0, %s118_s25  }
   0xf   :  { %112 = dma.done.wait [#allocation5], 256  }
  0x10   :  { %113 = vsyncadd [#allocation5], 4294967040  ;;  %s119_s26 = smov [#allocation7]   ;;  %s42_s30 = sshll.u32 %s152_s2, 4  ;;  %v32_v0 = vld [vmem:[#allocation4] sm:$0xff]  ;;  %v33_v1 = vld [vmem:[#allocation4 + $0x8] sm:$0xff]  ;;  %s43_s30 = int_to_ptr.hbm [resolvable:$true] %s42_s30 }
  0x11   :  { %s40_s27 = sshll.u32 %s119_s26, 4  ;;  %34 = vst [vmem:[#allocation7] sm:$0xff] %v32_v0  ;;  %s41_s27 = int_to_ptr.vmem [resolvable:$true] %s40_s27 }
  0x12   :  { %35 = vst [vmem:[#allocation7 + $0x8] sm:$0xff] %v33_v1 }
  0x13   :  { %48 = dma.vmem_to_hbm [thread:$0]  %s41_s27, 256, %s43_s30, [#allocation6], %s117_s0, %s117_s0, %s118_s25  }
  0x14   :  { %114 = dma.done.wait [#allocation6], 256  }
  0x15   :  { %115 = vsyncadd [#allocation6], 4294967040 }
  0x16   :  { %53 = vsyncpa [#allocation5], 1 }
  0x17   :  { %54 = vsyncpa [#allocation6], 1 }

</bundles_post_ra>
